<compile_context>
chip_gen: v7x
topology: tpu7x:2x2x1
jax: 0.10.0
libtpu: 0.0.40
codegen_flags: <defaults>
</compile_context>

<pallas_src>
import functools

import jax
import jax.numpy as jnp
from jax import lax
from jax.experimental import pallas as pl
from jax.experimental.pallas import tpu as pltpu


def _round_up(x, m):
    return ((x + m - 1) // m) * m


def _log_sigmoid(x):
    # numerically stable logsigmoid(x) = -(max(-x, 0) + log1p(exp(-|x|)))
    return -(jnp.maximum(-x, 0.0) + jnp.log1p(jnp.exp(-jnp.abs(x))))


def _skipgram_kernel(emb_d_ref, rhs_t_ref, out_ref, acc_ref, *,
                     tile_b, valid_b, valid_pn, need_row_mask, need_col_mask):
    s = pl.program_id(0)          # parallel split (v7x: one per TensorCore)
    j = pl.program_id(1)          # sequential B-tiles within the split
    nj = pl.num_programs(1)

    @pl.when(j == 0)
    def _init():
        acc_ref[...] = jnp.zeros_like(acc_ref)

    # One lane-dense MXU matmul: [tile_b, D] @ [D, PN_pad] -> [tile_b, PN_pad].
    scores = lax.dot_general(
        emb_d_ref[...], rhs_t_ref[...],
        dimension_numbers=(((1,), (0,)), ((), ())),
        preferred_element_type=jnp.float32,
    )

    contrib = _log_sigmoid(scores)

    # Mask padded rows / columns out of the loss (statically elided if there
    # is no padding).  logsigmoid(0) = -log 2, so padding MUST be masked.
    if need_row_mask or need_col_mask:
        valid = None
        if need_row_mask:
            row = (s * nj + j) * tile_b + lax.broadcasted_iota(
                jnp.int32, contrib.shape, 0)
            valid = row < valid_b
        if need_col_mask:
            col = lax.broadcasted_iota(jnp.int32, contrib.shape, 1)
            cmask = col < valid_pn
            valid = cmask if valid is None else (valid & cmask)
        contrib = jnp.where(valid, contrib, 0.0)

    # Pure-VPU accumulator update; keeps the XLU reduce off the per-tile path.
    acc_ref[...] += contrib

    @pl.when(j == nj - 1)
    def _final():
        partial = jnp.sum(acc_ref[...])           # one full reduce per split
        out_ref[...] = jnp.full(out_ref.shape, partial, jnp.float32)


def skipgram_forward(d_embeddings, u_embeddings, doc_u, pos_v, neg_v, *,
                     tile_b=128, num_splits=2):
    """loss = -sum(logsigmoid(D[doc_u] @ U[pos_v].T)) - sum(logsigmoid(-(D[doc_u] @ U[neg_v].T)))"""
    doc_size, D = d_embeddings.shape
    B = int(doc_u.shape[0])
    P = int(pos_v.shape[0])
    N = int(neg_v.shape[0])
    PN = P + N

    # Tile sizing: multiple of 8, no larger than (8-padded) B; pad B up to the
    # grid instead of shrinking the tile.
    tile_b = max(8, min(_round_up(tile_b, 8), _round_up(B, 8)))
    num_tiles = pl.cdiv(B, tile_b)
    num_splits = max(1, min(num_splits, num_tiles))     # v7x: 2 TCs; else 1
    tiles_per_split = pl.cdiv(num_tiles, num_splits)
    B_pad = num_splits * tiles_per_split * tile_b
    PN_pad = _round_up(PN, 128)   # lane-dense, unmasked MXU N dimension

    # Gathers + layout plumbing stay in the wrapper: 512 B rows are far below
    # efficient DMA granularity, so a streamed wrapper-side gather beats
    # per-row in-kernel DMAs.
    emb_d = jnp.take(d_embeddings, doc_u.astype(jnp.int32), axis=0)      # [B, D]
    if B_pad > B:
        emb_d = jnp.pad(emb_d, ((0, B_pad - B), (0, 0)))

    # Fold the negative-sample sign into the RHS, pre-transpose to [D, PN_pad].
    emb_v = jnp.take(u_embeddings, pos_v.astype(jnp.int32), axis=0)       # [P, D]
    emb_nv = jnp.take(u_embeddings, neg_v.astype(jnp.int32), axis=0)      # [N, D]
    rhs_t = jnp.concatenate([emb_v, -emb_nv], axis=0).T                   # [D, PN]
    if PN_pad > PN:
        rhs_t = jnp.pad(rhs_t, ((0, 0), (0, PN_pad - PN)))

    kernel = functools.partial(
        _skipgram_kernel, tile_b=tile_b, valid_b=B, valid_pn=PN,
        need_row_mask=(B_pad > B), need_col_mask=(PN_pad > PN))

    cost = pl.CostEstimate(
        flops=2 * B_pad * PN_pad * D,
        transcendentals=2 * B_pad * PN_pad,
        bytes_accessed=4 * (B_pad * D + D * PN_pad + num_splits * 8 * 128),
    )

    emb_d_map = lambda s, j: (s * tiles_per_split + j, 0)

    out = pl.pallas_call(
        kernel,
        out_shape=jax.ShapeDtypeStruct((num_splits * 8, 128), jnp.float32),
        grid_spec=pltpu.PrefetchScalarGridSpec(
            num_scalar_prefetch=0,
            grid=(num_splits, tiles_per_split),
            in_specs=[
                # doc-embedding rows streamed in big lane-dense tiles
                pl.BlockSpec((tile_b, D), emb_d_map),
                # pre-transposed [pos | -neg] RHS, resident across the grid
                pl.BlockSpec((D, PN_pad), lambda s, j: (0, 0)),
            ],
            out_specs=pl.BlockSpec((8, 128), lambda s, j: (s, 0)),
            scratch_shapes=[pltpu.VMEM((tile_b, PN_pad), jnp.float32)],
        ),
        compiler_params=pltpu.CompilerParams(
            dimension_semantics=("parallel", "arbitrary"),
            vmem_limit_bytes=32 * 1024 * 1024,
        ),
        cost_estimate=cost,
    )(emb_d, rhs_t)

    # Each split broadcast its partial sum over its own (8, 128) slab.
    partials = out[::8, 0]                       # [num_splits]
    return -jnp.sum(partials)


class SkipGramModelJax:
    def __init__(self, doc_size, voc_size, emb_dimension, key):
        self.doc_size = doc_size
        self.voc_size = voc_size
        self.emb_dimension = emb_dimension
        initrange = 0.5 / emb_dimension * 10
        kd, ku, kv = jax.random.split(key, 3)
        self.d_embeddings = jax.random.uniform(
            kd, (doc_size, emb_dimension), jnp.float32, -initrange, initrange)
        self.u_embeddings = jax.random.uniform(
            ku, (voc_size, emb_dimension), jnp.float32, -initrange, initrange)
        # v_embeddings is allocated by the PyTorch module but unused in forward.
        self.v_embeddings = jax.random.uniform(
            kv, (voc_size, emb_dimension), jnp.float32, -initrange, initrange)

    def forward(self, doc_u, pos_v, neg_v):
        return skipgram_forward(self.d_embeddings, self.u_embeddings,
                                doc_u, pos_v, neg_v)

    # TODO(synk): save_embedding (pickle / file I/O) is host-side and has no
    # Pallas equivalent; omitted.


def _reference(model, doc_u, pos_v, neg_v):
    emb_d = jnp.take(model.d_embeddings, doc_u, axis=0)
    emb_v = jnp.take(model.u_embeddings, pos_v, axis=0)
    emb_neg_v = jnp.take(model.u_embeddings, neg_v, axis=0)
    sp = emb_d @ emb_v.T
    sn = emb_d @ emb_neg_v.T
    return -jnp.sum(jax.nn.log_sigmoid(sp)) + -jnp.sum(jax.nn.log_sigmoid(-sn))


if __name__ == "__main__":
    doc_size, voc_size, emb_dimension = 64, 128, 128
    # B=300 with tile_b=128 -> 3 tiles -> 2 splits x 2 tiles (B padded to 512):
    # exercises the parallel split, multi-tile accumulation, and both masks.
    B, P, N = 300, 8, 16

    key = jax.random.PRNGKey(0)
    kmodel, kd, kp, kn = jax.random.split(key, 4)

    model = SkipGramModelJax(doc_size, voc_size, emb_dimension, kmodel)

    doc_u = jax.random.randint(kd, (B,), 0, doc_size)
    pos_v = jax.random.randint(kp, (P,), 0, voc_size)
    neg_v = jax.random.randint(kn, (N,), 0, voc_size)

    loss = jax.block_until_ready(model.forward(doc_u, pos_v, neg_v))

    ref = _reference(model, doc_u, pos_v, neg_v)
    assert jnp.allclose(loss, ref, rtol=1e-4, atol=1e-2), (loss, ref)

    print("KERNEL_OK")
</pallas_src>

<mosaic_0001>
module attributes {stable_mosaic.version = 11 : i64} {
  func.func @_skipgram_kernel(%arg0: i32, %arg1: i32, %arg2: memref<128x128xf32, #tpu.memory_space<vmem>>, %arg3: memref<128x128xf32, #tpu.memory_space<vmem>>, %arg4: memref<8x128xf32, #tpu.memory_space<vmem>>, %arg5: memref<128x128xf32, #tpu.memory_space<vmem>>) attributes {dimension_semantics = [#tpu.dimension_semantics<parallel>, #tpu.dimension_semantics<arbitrary>], iteration_bounds = array<i64: 2, 2>, scalar_prefetch = 0 : i64, scratch_operands = 1 : i64, tpu.core_type = #tpu.core_type<tc>, window_params = [{transform_indices = @transform_0, window_bounds = array<i64: 128, 128>}, {pipeline_mode = #tpu.pipeline_mode<synchronous>, transform_indices = @transform_1, window_bounds = array<i64: 128, 128>}, {transform_indices = @transform_2, window_bounds = array<i64: 8, 128>}]} {
    %c0_i32 = arith.constant 0 : i32
    %0 = arith.cmpi eq, %arg1, %c0_i32 : i32
    %1 = arith.extui %0 : i1 to i32
    %c0_i32_0 = arith.constant 0 : i32
    %2 = arith.cmpi ne, %1, %c0_i32_0 : i32
    scf.if %2 {
      %cst_14 = arith.constant 0.000000e+00 : f32
      %38 = vector.broadcast %cst_14 : f32 to vector<128x128xf32>
      %c0_15 = arith.constant 0 : index
      %c0_16 = arith.constant 0 : index
      %39 = vector.load %arg5[%c0_15, %c0_16] : memref<128x128xf32, #tpu.memory_space<vmem>>, vector<128x128xf32>
      tpu.vector_store %arg5[%c0_15, %c0_16], %38 {strides = array<i32>} : memref<128x128xf32, #tpu.memory_space<vmem>>, vector<128x128xf32>,
    } else {
    }
    %c0 = arith.constant 0 : index
    %c0_1 = arith.constant 0 : index
    %3 = vector.load %arg2[%c0, %c0_1] : memref<128x128xf32, #tpu.memory_space<vmem>>, vector<128x128xf32>
    %c0_2 = arith.constant 0 : index
    %c0_3 = arith.constant 0 : index
    %4 = vector.load %arg3[%c0_2, %c0_3] : memref<128x128xf32, #tpu.memory_space<vmem>>, vector<128x128xf32>
    %cst = arith.constant dense<0.000000e+00> : vector<128x128xf32>
    %5 = tpu.matmul %3, %4, %cst {dimension_numbers = #tpu.dot_dimension_numbers<[1], [0], [0], [1], [0, 0, 1, 1], [], []>} : vector<128x128xf32>, vector<128x128xf32>, vector<128x128xf32> -> vector<128x128xf32>
    %cst_4 = arith.constant 0.000000e+00 : f32
    %6 = vector.broadcast %cst_4 : f32 to vector<128x128xf32>
    %7 = arith.subf %6, %5 : vector<128x128xf32>
    %cst_5 = arith.constant 0.000000e+00 : f32
    %8 = vector.broadcast %cst_5 : f32 to vector<128x128xf32>
    %9 = arith.maximumf %7, %8 : vector<128x128xf32>
    %10 = math.absf %5 : vector<128x128xf32>
    %cst_6 = arith.constant 0.000000e+00 : f32
    %11 = vector.broadcast %cst_6 : f32 to vector<128x128xf32>
    %12 = arith.subf %11, %10 : vector<128x128xf32>
    %13 = math.exp %12 : vector<128x128xf32>
    %14 = math.log1p %13 : vector<128x128xf32>
    %15 = arith.addf %9, %14 : vector<128x128xf32>
    %cst_7 = arith.constant 0.000000e+00 : f32
    %16 = vector.broadcast %cst_7 : f32 to vector<128x128xf32>
    %17 = arith.subf %16, %15 : vector<128x128xf32>
    %c2_i32 = arith.constant 2 : i32
    %18 = arith.muli %arg0, %c2_i32 : i32
    %19 = arith.addi %18, %arg1 : i32
    %c128_i32 = arith.constant 128 : i32
    %20 = arith.muli %19, %c128_i32 : i32
    %21 = tpu.iota {dimensions = array<i32: 0>} : vector<128x128xi32>
    %22 = vector.broadcast %20 : i32 to vector<128x128xi32>
    %23 = arith.addi %22, %21 : vector<128x128xi32>
    %c300_i32 = arith.constant 300 : i32
    %24 = vector.broadcast %c300_i32 : i32 to vector<128x128xi32>
    %25 = arith.cmpi slt, %23, %24 : vector<128x128xi32>
    %26 = tpu.iota {dimensions = array<i32: 1>} : vector<128x128xi32>
    %c24_i32 = arith.constant 24 : i32
    %27 = vector.broadcast %c24_i32 : i32 to vector<128x128xi32>
    %28 = arith.cmpi slt, %26, %27 : vector<128x128xi32>
    %29 = arith.andi %25, %28 : vector<128x128xi1>
    %cst_8 = arith.constant 0.000000e+00 : f32
    %30 = vector.broadcast %cst_8 : f32 to vector<128x128xf32>
    %31 = arith.select %29, %17, %30 : vector<128x128xi1>, vector<128x128xf32>
    %c0_9 = arith.constant 0 : index
    %c0_10 = arith.constant 0 : index
    %32 = vector.load %arg5[%c0_9, %c0_10] : memref<128x128xf32, #tpu.memory_space<vmem>>, vector<128x128xf32>
    %33 = arith.addf %32, %31 : vector<128x128xf32>
    %c0_11 = arith.constant 0 : index
    %c0_12 = arith.constant 0 : index
    %34 = vector.load %arg5[%c0_11, %c0_12] : memref<128x128xf32, #tpu.memory_space<vmem>>, vector<128x128xf32>
    tpu.vector_store %arg5[%c0_11, %c0_12], %33 {strides = array<i32>} : memref<128x128xf32, #tpu.memory_space<vmem>>, vector<128x128xf32>,
    %c1_i32 = arith.constant 1 : i32
    %35 = arith.cmpi eq, %arg1, %c1_i32 : i32
    %36 = arith.extui %35 : i1 to i32
    %c0_i32_13 = arith.constant 0 : i32
    %37 = arith.cmpi ne, %36, %c0_i32_13 : i32
    scf.if %37 {
      %c0_14 = arith.constant 0 : index
      %c0_15 = arith.constant 0 : index
      %38 = vector.load %arg5[%c0_14, %c0_15] : memref<128x128xf32, #tpu.memory_space<vmem>>, vector<128x128xf32>
      %39 = vector.shape_cast %38 : vector<128x128xf32> to vector<1x128x128xf32>
      %cst_16 = arith.constant dense<0.000000e+00> : vector<1xf32>
      %40 = vector.multi_reduction <add>, %39, %cst_16 [1, 2] : vector<1x128x128xf32> to vector<1xf32>
      %41 = vector.shape_cast %40 : vector<1xf32> to vector<1x1x1xf32>
      %42 = vector.extract %41[0, 0, 0] : f32 from vector<1x1x1xf32>
      %43 = vector.broadcast %42 : f32 to vector<8x128xf32>
      %c0_17 = arith.constant 0 : index
      %c0_18 = arith.constant 0 : index
      %44 = vector.load %arg4[%c0_17, %c0_18] : memref<8x128xf32, #tpu.memory_space<vmem>>, vector<8x128xf32>
      tpu.vector_store %arg4[%c0_17, %c0_18], %43 {strides = array<i32>} : memref<8x128xf32, #tpu.memory_space<vmem>>, vector<8x128xf32>,
    } else {
    }
    return
  }
  func.func @transform_0(%arg0: i32, %arg1: i32) -> (i32, i32) {
    %c2_i32 = arith.constant 2 : i32
    %0 = arith.muli %arg0, %c2_i32 : i32
    %1 = arith.addi %0, %arg1 : i32
    %c0_i32 = arith.constant 0 : i32
    %c0_i32_0 = arith.constant 0 : i32
    return %1, %c0_i32 : i32, i32
  }
  func.func @transform_1(%arg0: i32, %arg1: i32) -> (i32, i32) {
    %c0_i32 = arith.constant 0 : i32
    %c0_i32_0 = arith.constant 0 : i32
    %c0_i32_1 = arith.constant 0 : i32
    return %c0_i32, %c0_i32_0 : i32, i32
  }
  func.func @transform_2(%arg0: i32, %arg1: i32) -> (i32, i32) {
    %c0_i32 = arith.constant 0 : i32
    %c0_i32_0 = arith.constant 0 : i32
    return %arg0, %c0_i32 : i32, i32
  }
}

</mosaic_0001>

<bundles_post_ra>
// kernel: tpu_custom_call.1
= control target key start
LH: loop header
LB: loop body
LE: loop exit
PB: predicated region body
PF: predicated region fallthrough
CT: control target
= control target key end

     0   :  { %s2128_s0 = inlined_call_operand.hbm [shape: f32[512,128], index: 0, kind: input, shape index: {}]   ;;  %s2129_s1 = inlined_call_operand.hbm [shape: f32[128,128], index: 1, kind: input, shape index: {}]   ;;  %s2130_s2 = inlined_call_operand.hbm [shape: f32[16,128], index: 2, kind: output, shape index: {}]  }
   0x1   :  { %2146 = sst [smem:[#allocation19_spill]] %s2129_s1 }
   0x2   :  { %2147 = sst [smem:[#allocation20_spill]] %s2130_s2 }
   0x3   :  { %7 = vsyncpa [#allocation4], 0 }
   0x4   :  { %9 = vsyncpa [#allocation4 + $0x1], 0 }
   0x5   :  { %10 = vsyncpa [#allocation7], 0 }
   0x6   :  { %11 = vsyncpa [#allocation5], 0 }
   0x7   :  { %13 = vsyncpa [#allocation5 + $0x1], 0  ;;  %s1505_s9 = smov 0   ;;  %s1507_s10 = smov 0  }
   0x8   :  { %s1509_s11 = smov 0   ;;  %s1511_s12 = smov 0  }
   0x9   :  { %s1513_s13 = smov 0   ;;  %s1515_s14 = smov 0  }
   0xa   :  { %s1517_s15 = smov 0   ;;  %s1519_s16 = smov 0  }
   0xb   :  { %s1521_s17 = smov 0   ;;  %s1523_s18 = smov 0  }
   0xc   :  { %s1525_s19 = smov 0  }
   0xd LB: > { %2148 = sst [smem:[#allocation12_spill]] %s1442_s9  ;;  %s956_s20 = sadd.s32 4294967295, %s1482_s19   ;;  %s1482_s19 = sphi %s1525_s19, %s19_s19   ;;  %s1478_s18 = sphi %s1523_s18, %s2218_s18   ;;  %s1474_s17 = sphi %s1521_s17, %s2217_s17   ;;  %s1470_s16 = sphi %s1519_s16, %s2216_s16   ;;  %s1466_s15 = sphi %s1517_s15, %s2209_s15   ;;  %s1462_s14 = sphi %s1515_s14, %s2215_s14   ;;  %s1458_s13 = sphi %s1513_s13, %s2214_s13   ;;  %s1454_s12 = sphi %s1511_s12, %s2213_s12   ;;  %s1450_s11 = sphi %s1509_s11, %s2212_s11   ;;  %s1446_s10 = sphi %s1507_s10, %s2211_s10   ;;  %s1442_s9 = sphi %s1505_s9, %s2210_s9  }
   0xe   : > { %2149 = sst [smem:[#allocation13_spill]] %s1470_s16  ;;  %s957_s21 = sadd.s32 4294967294, %s1482_s19  }
   0xf   : > { %2150 = sst [smem:[#allocation14_spill]] %s1474_s17  ;;  %p55_p0 = scmp.ne.s32.totalorder %s1458_s13, %s1454_s12 }
  0x10   : > { %p1561_p1 = scmp.eq.s32.totalorder %s956_s20, 0  ;;  %p99_p2 = scmp.ne.s32.totalorder %s1450_s11, %s1446_s10 }
  0x11   : > { %p100_p4 = scmp.eq.s32.totalorder %s956_s20, 3  ;;  %p105_p5 = scmp.ne.s32.totalorder %s1446_s10, %s1442_s9 }
  0x12   : > { %s2151_s22 = scalar_select %p1561_p1, 1, 0 }
  0x13   : > { %p1569_p3 = por %p1561_p1, %p55_p0  ;;  %p106_p6 = scmp.eq.s32.totalorder %s957_s21, 3 }
  0x14   : > { %p1575_p7 = por %p100_p4, %p99_p2  ;;  %p960_p8 = scmp.ge.s32.totalorder %s1482_s19, 1 }
  0x15   : > { %s2152_s23 = scalar_select %p1569_p3, 1, 0 }
  0x16   : > { %s2153_s24 = scalar_select %p1575_p7, 1, 0 }
  0x17   : > { %p1580_p9 = por %p106_p6, %p105_p5  ;;  %p113_p10 = scmp.lt.s32.totalorder %s1482_s19, 5 }
  0x18   : > { %2154 = sst [smem:[#allocation15_spill]] %s2153_s24  ;;  %s1484_s27 = smov [#allocation6]  }
  0x19   : > { %s2155_s25 = scalar_select %p1580_p9, 1, 0 }
  0x1a   : > { %p1585_p11 = pnand %p960_p8, %p113_p10  ;;  %s125_s28 = sshll.u32 %s1484_s27, 4  ;;  %s126_s28 = int_to_ptr.vmem [resolvable:$true] %s125_s28 }
  0x1b   : > { %2156 = sst [smem:[#allocation16_spill]] %s2155_s25  ;;  %s2159_s1 = sld [smem:[#allocation19_spill]] }
  0x1c   : > { %s2157_s26 = scalar_select %p1585_p11, 1, 0 }
  0x1d   : > { %p1126_p12 = pneg %p1585_p11 }
  0x1f   : > { %p1593_p13 = pnand %p1126_p12, %p1561_p1 }
  0x21   : > { %s1298_s4 = scalar_lea.hbm %s2159_s1, 2048  ;;  %p1300_p2 = pneg %p1593_p13 }
  0x22   : > { %p1299_p0 = scmp.ne.s32.totalorder %s2159_s1, %s1298_s4  ;;  %p1305_p6 = scmp.lt.u32.totalorder %s1298_s4, %s2159_s1 }
  0x24   : > { %p1301_p4 = pnand %p1300_p2, %p1299_p0 }
  0x26   : > { %p1302_p5 = pneg %p1301_p4 }
  0x28   : > { %p1307_p8 = pnand %p1305_p6, %p1302_p5 }
  0x2a   : > { %1310 = shalt.err (!%p1307_p8)
}
  0x2b   : > { %s1311_s12 = scalar_lea.vmem %s126_s28, 2048  ;;  %p1319_p7 = scmp.lt.s32.totalorder %s126_s28, %s126_s28 }
  0x2c   : > { %p1312_p10 = scmp.ne.s32.totalorder %s126_s28, %s1311_s12  ;;  %p1320_p1 = scmp.lt.s32.totalorder %s1311_s12, %s1311_s12 }
  0x2e   : > { %p1314_p12 = pnand %p1312_p10, %p1300_p2  ;;  %p1321_p3 = por %p1320_p1, %p1319_p7 }
  0x30   : > { %p1315_p9 = pneg %p1314_p12 }
  0x32   : > { %p1322_p11 = pnand %p1321_p3, %p1315_p9 }
  0x34   : > { %1325 = shalt.err (!%p1322_p11)
}
  0x35   : > { %s2136_s20 = smov 128   ;;  %s2137_s21 = smov 8  }
  0x36   : > { %1129 = dma.hbm_to_vmem [thread:$0]  (!%p1593_p13), %s2159_s1, 2048, %s126_s28, [#allocation7], %s2136_s20, %s2136_s20, %s2137_s21  }
  0x37   : > { %s89_s3 = sadd.s32 1, %s1450_s11  ;;  %s28_s4 = sadd.s32 1, %s1474_s17 }
  0x38   : > { %p29_p1 = scmp.ge.s32.totalorder %s28_s4, 2  ;;  %s31_s5 = sadd.s32 1, %s1478_s18 }
  0x39   : > { %s958_s6 = sshll.u32 %s1478_s18, 1  ;;  %s42_s7 = sadd.s32 1, %s1462_s14 }
  0x3a   : > { %s2220_s4 = smov (%p29_p1, %s28_s4), 0  ;;  %s2222_s5 = smov (!%p29_p1, %s31_s5), %s1478_s18 }
  0x3b   : > { %p49_p3 = scmp.ne.s32.totalorder %s1462_s14, %s1458_s13  ;;  %p33_p7 = scmp.ge.s32.totalorder %s2222_s5, 2 }
  0x3c   : > { %p50_p9 = scmp.eq.s32.totalorder %s1482_s19, 0  ;;  %s36_s29 = sadd.s32 %s1474_s17, %s958_s6 }
  0x3d   : > { %p1139_p11 = scmp.lt.s32.totalorder %s1482_s19, 4  ;;  %s2224_s5 = smov (%p33_p7, %s2222_s5), 0 }
  0x3e   : > { %p1631_p13 = por %p50_p9, %p49_p3  ;;  %s139_s8 = sand.u32 1, %s1462_s14  }
  0x3f   : > { %s959_s12 = sshll.u32 %s2224_s5, 1  ;;  %s86_s27 = ssub.s32 %s1478_s18, %s2224_s5 }
  0x40   : > { %s38_s30 = sadd.s32 %s959_s12, %s2220_s4  ;;  %p87_p0 = scmp.eq.s32.totalorder %s86_s27, 0 }
  0x41   : > { %s39_s20 = ssub.s32 %s36_s29, %s38_s30  ;;  %s963_s21 = sshll.u32 %s139_s8, 7 }
  0x42   : > { %p40_p2 = scmp.eq.s32.totalorder %s39_s20, 0  ;;  %s979_s17 = sshll.u32 %s36_s29, 11 }
  0x43   : > { %s1641_s6 = scalar_select %p87_p0, %s1450_s11, %s89_s3  }
  0x44   : > { %s1644_s1 = scalar_select %p40_p2, %s1462_s14, %s42_s7  }
  0x45   : > { %s143_s25 = scalar_lea.vmem [#allocation3], %s963_s21  ;;  %s1649_s16 = scalar_lea.hbm %s2128_s0, %s979_s17 }
  0x46   : > { %s152_s9 = sshll.u32 %s143_s25, 4  ;;  %p1657_p4 = pnand %p1139_p11, %p1631_p13  ;;  %s1651_s9 = int_to_ptr.vmem [resolvable:$true] %s152_s9 }
  0x47   : > { %s1661_s25 = scalar_lea.sflag [#allocation4], %s139_s8  ;;  %s1326_s21 = scalar_lea.hbm %s1649_s16, 2048 }
  0x48   : > { %p1327_p5 = scmp.ne.s32.totalorder %s1649_s16, %s1326_s21  ;;  %p1328_p6 = pneg %p1657_p4 }
  0x49   : > { %s1331_s24 = scalar_lea.hbm %s2128_s0, 8192  ;;  %p1332_p12 = scmp.lt.u32.totalorder %s1649_s16, %s2128_s0 }
  0x4a   : > { %p1329_p8 = pnand %p1328_p6, %p1327_p5  ;;  %p1333_p1 = scmp.lt.u32.totalorder %s1331_s24, %s1326_s21 }
  0x4b   : > { %p1335_p7 = scmp.lt.u32.totalorder %s1326_s21, %s1649_s16 }
  0x4c   : > { %p1330_p10 = pneg %p1329_p8  ;;  %p1334_p3 = por %p1333_p1, %p1332_p12 }
  0x4e   : > { %p1336_p9 = por %p1335_p7, %p1334_p3 }
  0x50   : > { %p1337_p11 = pnand %p1336_p9, %p1330_p10 }
  0x52   : > { %1340 = shalt.err (!%p1337_p11)
}
  0x53   : > { %s1341_s29 = scalar_lea.vmem %s1651_s9, 2048  ;;  %s1487_s28 = smov [#allocation3]  }
  0x54   : > { %p1342_p13 = scmp.ne.s32.totalorder %s1651_s9, %s1341_s29  ;;  %s1346_s8 = sshll.u32 %s1487_s28, 4  ;;  %s1347_s8 = int_to_ptr.vmem [resolvable:$false] %s1346_s8 }
  0x55   : > { %s1348_s12 = scalar_lea.vmem %s1347_s8, 4096  ;;  %p1349_p5 = scmp.lt.s32.totalorder %s1651_s9, %s1347_s8 }
  0x56   : > { %p1344_p0 = pnand %p1342_p13, %p1328_p6  ;;  %p1350_p8 = scmp.lt.s32.totalorder %s1348_s12, %s1341_s29 }
  0x58   : > { %p1345_p2 = pneg %p1344_p0  ;;  %p1351_p12 = por %p1350_p8, %p1349_p5 }
  0x5a   : > { %p1352_p1 = pnand %p1351_p12, %p1345_p2 }
  0x5c   : > { %1355 = shalt.err (!%p1352_p1)
}
  0x5d   : > { %s2162_s27 = smov 8   ;;  %s2163_s30 = smov 128  }
  0x5e   : > { %1133 = dma.hbm_to_vmem [thread:$0]  (!%p1657_p4), %s1649_s16, 2048, %s1651_s9, %s1661_s25, %s2163_s30, %s2163_s30, %s2162_s27  }
  0x5f   : > { %p2164_p6 = scmp.ne.s32.totalorder %s2157_s26, 0 }
  0x61   : > { %164 = sbr.rel (%p2164_p6) target bundleno = 720 (0x2d0), region = 28 }
  0x68   : > { %s166_s21 = sand.u32 1, %s1458_s13   ;;  %p2165_p10 = scmp.ne.s32.totalorder %s2152_s23, 0 }
  0x69   : > { %s968_s2 = sshll.u32 %s166_s21, 7  ;;  %s167_s17 = scalar_lea.sflag [#allocation4], %s166_s21 }
  0x6a   : > { %s1695_s24 = scalar_lea.vmem [#allocation3], %s968_s2 }
  0x6b   : > { %1429 = dma.done.wait (%p2165_p10), %s167_s17, 2048  }
  0x6c   : > { %1431 = vsyncadd (%p2165_p10), %s167_s17, 4294965248  ;;  %p2166_p3 = scmp.ne.s32.totalorder %s2151_s22, 0 }
  0x6e   : > { %1433 = dma.done.wait (%p2166_p3), [#allocation7], 2048  }
  0x6f   : > { %1435 = vsyncadd (%p2166_p3), [#allocation7], 4294965248  ;;  %s192_s9 = sand.u32 1, %s1446_s10   ;;  %p971_p4 = scmp.ne.s32.totalorder %s1466_s15, 0 }
  0x70   : > { %s1708_s16 = sshll.u32 %s192_s9, 3  ;;  %v1488_v0 = vmov (!%p971_p4), 0.0  }
  0x71   : > { %s194_s26 = scalar_lea.vmem [#allocation8], %s1708_s16  ;;  %201 = sbr.rel (%p971_p4) target bundleno = 121 (0x79), region = 40  ;;  %202 = vst [vmem:[#allocation2] sm:$0xff] (!%p971_p4), %v1488_v0  ;;  %203 = vst [vmem:[#allocation2 + $0x8] sm:$0xff] (!%p971_p4), %v1488_v0 }
  0x72   : > { %204 = vst [vmem:[#allocation2 + $0x10] sm:$0xff] (!%p971_p4), %v1488_v0  ;;  %205 = vst [vmem:[#allocation2 + $0x18] sm:$0xff] (!%p971_p4), %v1488_v0 }
  0x73   : > { %206 = vst [vmem:[#allocation2 + $0x20] sm:$0xff] (!%p971_p4), %v1488_v0  ;;  %207 = vst [vmem:[#allocation2 + $0x28] sm:$0xff] (!%p971_p4), %v1488_v0 }
  0x74   : > { %208 = vst [vmem:[#allocation2 + $0x30] sm:$0xff] (!%p971_p4), %v1488_v0  ;;  %209 = vst [vmem:[#allocation2 + $0x38] sm:$0xff] (!%p971_p4), %v1488_v0 }
  0x75   : > { %210 = vst [vmem:[#allocation2 + $0x40] sm:$0xff] (!%p971_p4), %v1488_v0  ;;  %211 = vst [vmem:[#allocation2 + $0x48] sm:$0xff] (!%p971_p4), %v1488_v0 }
  0x76   : > { %212 = vst [vmem:[#allocation2 + $0x50] sm:$0xff] (!%p971_p4), %v1488_v0  ;;  %213 = vst [vmem:[#allocation2 + $0x58] sm:$0xff] (!%p971_p4), %v1488_v0 }
  0x77   : > { %214 = vst [vmem:[#allocation2 + $0x60] sm:$0xff] (!%p971_p4), %v1488_v0  ;;  %215 = vst [vmem:[#allocation2 + $0x68] sm:$0xff] (!%p971_p4), %v1488_v0 }
  0x78   : > { %216 = vst [vmem:[#allocation2 + $0x70] sm:$0xff] %v1488_v0  ;;  %217 = vst [vmem:[#allocation2 + $0x78] sm:$0xff] %v1488_v0 }
  0x79 PF: > { %v234_v1 = vld [vmem:[#allocation6] sm:$0xff]  ;;  %v235_v2 = vld [vmem:[#allocation6 + $0x8] sm:$0xff]  ;;  %v236_v3 = vld [vmem:[#allocation6 + $0x10] sm:$0xff]  ;;  %s2167_s22 = sld [smem:[#allocation13_spill]]  ;;  %v670_v41 = vlaneseq  ;;  %p974_p7 = scmp.ne.s32.totalorder %s1466_s15, 1 }
  0x7a   : > { %v1068_v4 = vpack.c.bf16 %v235_v2, %v234_v1  ;;  %v237_v5 = vld [vmem:[#allocation6 + $0x18] sm:$0xff]  ;;  %v238_v7 = vld [vmem:[#allocation6 + $0x20] sm:$0xff]  ;;  %v239_v8 = vld [vmem:[#allocation6 + $0x28] sm:$0xff] }
  0x7b   : > { %v1072_v6 = vpack.c.bf16 %v237_v5, %v236_v3  ;;  %v1076_v9 = vpack.c.bf16 %v239_v8, %v238_v7  ;;  %v218_v10 = vld [vmem:[%s1695_s24] sm:$0xff]  ;;  %v240_v12 = vld [vmem:[#allocation6 + $0x30] sm:$0xff]  ;;  %v241_v13 = vld [vmem:[#allocation6 + $0x38] sm:$0xff]  ;;  %v1730_v42 = vshrl.u32 %v670_v41, 7  ;;  %v1743_v52 = vand.u32 127, %v670_v41 }
  0x7c   : > { %1069 = vmatprep.subr.bf16.mxu0 %v1068_v4  ;;  %1100 = vmatprep.subr.bf16.mxu1 %v1068_v4  ;;  %v226_v11 = vld [vmem:[%s1695_s24 + $0x40] sm:$0xff]  ;;  %v1080_v14 = vpack.c.bf16 %v241_v13, %v240_v12  ;;  %v243_v16 = vld [vmem:[#allocation6 + $0x48] sm:$0xff]  ;;  %v244_v18 = vld [vmem:[#allocation6 + $0x50] sm:$0xff] }
  0x7d   : > { %1071 = vmatpush3.bf16.msra.mxu0 %v1068_v4  ;;  %1108 = vmatpush3.bf16.msra.mxu1 %v1068_v4  ;;  %v242_v15 = vld [vmem:[#allocation6 + $0x40] sm:$0xff]  ;;  %v245_v19 = vld [vmem:[#allocation6 + $0x58] sm:$0xff]  ;;  %v247_v22 = vld [vmem:[#allocation6 + $0x68] sm:$0xff]  ;;  %v672_v43 = vadd.s32 8, %v1730_v42  ;;  %v680_v44 = vadd.s32 72, %v1730_v42  ;;  %v679_v50 = vadd.s32 64, %v1730_v42 }
  0x7e   : > { %1073 = vmatprep.subr.bf16.mxu0 %v1072_v6  ;;  %1101 = vmatprep.subr.bf16.mxu1 %v1072_v6  ;;  %v1084_v17 = vpack.c.bf16 %v243_v16, %v242_v15  ;;  %v1088_v20 = vpack.c.bf16 %v245_v19, %v244_v18  ;;  %v246_v21 = vld [vmem:[#allocation6 + $0x60] sm:$0xff]  ;;  %v248_v24 = vld [vmem:[#allocation6 + $0x70] sm:$0xff]  ;;  %v249_v25 = vld [vmem:[#allocation6 + $0x78] sm:$0xff]  ;;  %v674_v56 = vadd.s32 24, %v1730_v42  ;;  %v682_v59 = vadd.s32 88, %v1730_v42 }
  0x7f   : > { %1044 = vmatprep.mubr.f32.mxu0 %v218_v10  ;;  %1056 = vmatprep.mubr.f32.mxu1 %v226_v11  ;;  %v1092_v23 = vpack.c.bf16 %v247_v22, %v246_v21  ;;  %v1096_v26 = vpack.c.bf16 %v249_v25, %v248_v24  ;;  %v219_v27 = vld [vmem:[%s1695_s24 + $0x8] sm:$0xff]  ;;  %v220_v29 = vld [vmem:[%s1695_s24 + $0x10] sm:$0xff]  ;;  %v221_v31 = vld [vmem:[%s1695_s24 + $0x18] sm:$0xff]  ;;  %s972_s23 = sshll.u32 %s2167_s22, 1  ;;  %v673_v60 = vadd.s32 16, %v1730_v42  ;;  %v681_v63 = vadd.s32 80, %v1730_v42 }
  0x80   : > { %v227_v28 = vld [vmem:[%s1695_s24 + $0x48] sm:$0xff]  ;;  %v228_v30 = vld [vmem:[%s1695_s24 + $0x50] sm:$0xff]  ;;  %v229_v32 = vld [vmem:[%s1695_s24 + $0x58] sm:$0xff]  ;;  %s668_s20 = sadd.s32 %s1466_s15, %s972_s23  ;;  %v676_v0 = vadd.s32 40, %v1730_v42  ;;  %vm722_vm2 = vcmp.lt.s32.totalorder %v1743_v52, 24 }
  0x81   : > { %1075 = vmatpush3.bf16.msra.mxu0 %v1072_v6  ;;  %1109 = vmatpush3.bf16.msra.mxu1 %v1072_v6  ;;  %v222_v33 = vld [vmem:[%s1695_s24 + $0x20] sm:$0xff]  ;;  %v223_v35 = vld [vmem:[%s1695_s24 + $0x28] sm:$0xff]  ;;  %v224_v37 = vld [vmem:[%s1695_s24 + $0x30] sm:$0xff]  ;;  %s973_s25 = sshll.u32 %s668_s20, 7 }
  0x82   : > { %1077 = vmatprep.subr.bf16.mxu0 %v1076_v9  ;;  %1102 = vmatprep.subr.bf16.mxu1 %v1076_v9  ;;  %v230_v34 = vld [vmem:[%s1695_s24 + $0x60] sm:$0xff]  ;;  %v231_v36 = vld [vmem:[%s1695_s24 + $0x68] sm:$0xff]  ;;  %v232_v38 = vld [vmem:[%s1695_s24 + $0x70] sm:$0xff]  ;;  %v1734_v45 = vstv %s973_s25 }
  0x83   : > { %v225_v39 = vld [vmem:[%s1695_s24 + $0x38] sm:$0xff]  ;;  %v1741_v51 = vadd.s32 %v1734_v45, %v672_v43  ;;  %v1746_v53 = vadd.s32 %v1734_v45, %v680_v44  ;;  %v1761_v3 = vadd.s32 %v1734_v45, %v1730_v42  ;;  %v1764_v4 = vadd.s32 %v1734_v45, %v679_v50 }
  0x84   : > { %v233_v40 = vld [vmem:[%s1695_s24 + $0x78] sm:$0xff]  ;;  %v1767_v10 = vadd.s32 %v1734_v45, %v674_v56  ;;  %v1773_v15 = vadd.s32 %v1734_v45, %v673_v60  ;;  %v1777_v21 = vadd.s32 %v1734_v45, %v681_v63 }
  0x85   : > { %1079 = vmatpush3.bf16.msra.mxu0 %v1076_v9  ;;  %1110 = vmatpush3.bf16.msra.mxu1 %v1076_v9  ;;  %vm705_vm1 = vcmp.lt.s32.totalorder %v1741_v51, 300  ;;  %vm713_vm4 = vcmp.lt.s32.totalorder %v1746_v53, 300  ;;  %vm704_vm6 = vcmp.lt.s32.totalorder %v1761_v3, 300  ;;  %vm712_vm7 = vcmp.lt.s32.totalorder %v1764_v4, 300 }
  0x86   : > { %1081 = vmatprep.subr.bf16.mxu0 %v1080_v14  ;;  %1103 = vmatprep.subr.bf16.mxu1 %v1080_v14  ;;  %vm707_vm9 = vcmp.lt.s32.totalorder %v1767_v10, 300  ;;  %vm706_vm14 = vcmp.lt.s32.totalorder %v1773_v15, 300  ;;  %vm1880_vm15 = vmand %vm705_vm1, %vm722_vm2  ;;  %vm714_vm1 = vcmp.lt.s32.totalorder %v1777_v21, 300  ;;  %v684_v3 = vadd.s32 104, %v1730_v42 }
  0x89   : > { %1083 = vmatpush3.bf16.msra.mxu0 %v1080_v14  ;;  %1111 = vmatpush3.bf16.msra.mxu1 %v1080_v14  ;;  %v1770_v14 = vadd.s32 %v1734_v45, %v682_v59 }
  0x8a   : > { %1085 = vmatprep.subr.bf16.mxu0 %v1084_v17  ;;  %1104 = vmatprep.subr.bf16.mxu1 %v1084_v17 }
  0x8b   : > { %vm715_vm12 = vcmp.lt.s32.totalorder %v1770_v14, 300 }
  0x8d   : > { %1087 = vmatpush3.bf16.msra.mxu0 %v1084_v17  ;;  %1112 = vmatpush3.bf16.msra.mxu1 %v1084_v17 }
  0x8e   : > { %1089 = vmatprep.subr.bf16.mxu0 %v1088_v20  ;;  %1105 = vmatprep.subr.bf16.mxu1 %v1088_v20 }
  0x91   : > { %1091 = vmatpush3.bf16.msra.mxu0 %v1088_v20  ;;  %1113 = vmatpush3.bf16.msra.mxu1 %v1088_v20 }
  0x92   : > { %1093 = vmatprep.subr.bf16.mxu0 %v1092_v23  ;;  %1106 = vmatprep.subr.bf16.mxu1 %v1092_v23 }
  0x95   : > { %1095 = vmatpush3.bf16.msra.mxu0 %v1092_v23  ;;  %1114 = vmatpush3.bf16.msra.mxu1 %v1092_v23  ;;  %v1780_v23 = vadd.s32 %v1734_v45, %v676_v0 }
  0x96   : > { %1097 = vmatprep.subr.bf16.mxu0 %v1096_v26  ;;  %1107 = vmatprep.subr.bf16.mxu1 %v1096_v26 }
  0x99   : > { %1099 = vmatpush3.bf16.msra.mxu0 %v1096_v26  ;;  %1115 = vmatpush3.bf16.msra.mxu1 %v1096_v26 }
  0x9c   : > { %1045 = vmatmul.mubr.f32.vlgmr.msra.gmra.mrb[0].mxu0 %v219_v27  ;;  %1057 = vmatmul.mubr.f32.vlgmr.msra.gmra.mrb[0].mxu1 %v227_v28 }
  0x9d   : > { %1047 = vmatprep.mubr.f32.mxu0 %v220_v29  ;;  %1059 = vmatprep.mubr.f32.mxu1 %v228_v30 }
  0xa0   : > { %1048 = vmatmul.mubr.f32.gmra.mrb[2].mxu0 %v221_v31  ;;  %1060 = vmatmul.mubr.f32.gmra.mrb[2].mxu1 %v229_v32 }
  0xa1   : > { %1050 = vmatprep.mubr.f32.mxu0 %v222_v33  ;;  %1062 = vmatprep.mubr.f32.mxu1 %v230_v34 }
  0xa4   : > { %1051 = vmatmul.mubr.f32.gmra.mrb[4].mxu0 %v223_v35  ;;  %1063 = vmatmul.mubr.f32.gmra.mrb[4].mxu1 %v231_v36 }
  0xa5   : > { %1053 = vmatprep.mubr.f32.mxu0 %v224_v37  ;;  %1065 = vmatprep.mubr.f32.mxu1 %v232_v38 }
  0xa8   : > { %1054 = vmatmul.mubr.f32.gmra.mrb[6].mxu0 %v225_v39  ;;  %1066 = vmatmul.mubr.f32.gmra.mrb[6].mxu1 %v233_v40 }
 0x16f   : > { %v1046_v46 = vpop.f32.mrb[0].mxu0  ;;  %v1736_v47 = vpop.f32.mrb[0].mxu1 }
 0x170   : > { %v428_v48 = vand.u32 2147483647, %v1046_v46  ;;  %v436_v49 = vand.u32 2147483647, %v1736_v47  ;;  %v1748_v54 = vpop.f32.mrb[1].mxu0  ;;  %v1750_v55 = vpop.f32.mrb[1].mxu1 }
 0x171   : > { %v427_v61 = vand.u32 2147483647, %v1748_v54  ;;  %v435_v62 = vand.u32 2147483647, %v1750_v55  ;;  %v396_v7 = vsub.f32 0.0, %v1046_v46  ;;  %v404_v19 = vsub.f32 0.0, %v1736_v47 }
 0x172   : > { %v444_v57 = vsub.f32 0.0, %v428_v48  ;;  %v452_v58 = vsub.f32 0.0, %v436_v49  ;;  %v395_v30 = vsub.f32 0.0, %v1748_v54  ;;  %v403_v33 = vsub.f32 0.0, %v1750_v55 }
 0x173   : > { %v1049_v5 = vpop.f32.mrb[2].mxu0  ;;  %v1061_v6 = vpop.f32.mrb[2].mxu1  ;;  %v443_v8 = vsub.f32 0.0, %v427_v61  ;;  %v451_v9 = vsub.f32 0.0, %v435_v62  ;;  %v1784_v25 = vmax.f32 %v396_v7, 0.0  ;;  %v1801_v49 = vmax.f32 %v404_v19, 0.0 }
 0x174   : > { %v461_v1 = vmul.f32 1.442695, %v444_v57  ;;  %v477_v2 = vmul.f32 1.442695, %v452_v58  ;;  %v326_v11 = vpop.f32.mrb[3].mxu0  ;;  %v366_v12 = vpop.f32.mrb[3].mxu1 }
 0x175   : > { %v430_v13 = vand.u32 2147483647, %v1049_v5  ;;  %v459_v16 = vmul.f32 1.442695, %v443_v8  ;;  %v475_v17 = vmul.f32 1.442695, %v451_v9 }
 0x176   : > { %1234 = vpow2.f32 %v461_v1  ;;  %v438_v18 = vand.u32 2147483647, %v1061_v6  ;;  %v429_v27 = vand.u32 2147483647, %v326_v11  ;;  %v437_v32 = vand.u32 2147483647, %v366_v12 }
 0x177   : > { %1236 = vpow2.f32 %v477_v2  ;;  %v446_v20 = vsub.f32 0.0, %v430_v13  ;;  %v1052_v22 = vpop.f32.mrb[4].mxu0  ;;  %v1782_v24 = vpop.f32.mrb[4].mxu1  ;;  %v398_v34 = vsub.f32 0.0, %v1049_v5  ;;  %v406_v38 = vsub.f32 0.0, %v1061_v6 }
 0x178   : > { %2168 = vst [vmem:[#allocation17_spill] sm:$0xff] %v1782_v24  ;;  %1238 = vpow2.f32 %v459_v16  ;;  %v454_v26 = vsub.f32 0.0, %v438_v18  ;;  %v1786_v28 = vpop.f32.mrb[5].mxu0  ;;  %v1788_v29 = vpop.f32.mrb[5].mxu1  ;;  %v445_v36 = vsub.f32 0.0, %v429_v27  ;;  %v453_v39 = vsub.f32 0.0, %v437_v32 }
 0x179   : > { %2169 = vst [vmem:[#allocation18_spill] sm:$0xff] %v1786_v28  ;;  %1240 = vpow2.f32 %v475_v17  ;;  %v465_v31 = vmul.f32 1.442695, %v446_v20  ;;  %v432_v40 = vand.u32 2147483647, %v1052_v22  ;;  %v397_v44 = vsub.f32 0.0, %v326_v11 }
 0x17a   : > { %v481_v35 = vmul.f32 1.442695, %v454_v26  ;;  %v463_v46 = vmul.f32 1.442695, %v445_v36  ;;  %v440_v47 = vand.u32 2147483647, %v1782_v24 }
 0x17b   : > { %v1792_v37 = vpop.f32.mrb[6].mxu0  ;;  %1242 = vpow2.f32 %v465_v31  ;;  %v1794_v41 = vpop.f32.mrb[6].mxu1  ;;  %v405_v50 = vsub.f32 0.0, %v366_v12  ;;  %v479_v54 = vmul.f32 1.442695, %v453_v39  ;;  %v448_v55 = vsub.f32 0.0, %v432_v40 }
 0x17c   : > { %v1796_v43 = vpop.f32.mrb[7].mxu0  ;;  %1244 = vpow2.f32 %v481_v35  ;;  %v1799_v48 = vpop.f32.mrb[7].mxu1  ;;  %v1803_v56 = vmax.f32 %v395_v30, 0.0  ;;  %v1805_v57 = vmax.f32 %v403_v33, 0.0  ;;  %v400_v58 = vsub.f32 0.0, %v1052_v22 }
 0x17d   : > { %1246 = vpow2.f32 %v463_v46  ;;  %v1807_v60 = vmax.f32 %v398_v34, 0.0  ;;  %v1809_v61 = vmax.f32 %v406_v38, 0.0  ;;  %v469_v62 = vmul.f32 1.442695, %v448_v55 }
 0x17e   : > { %1248 = vpow2.f32 %v479_v54  ;;  %v1811_v2 = vmax.f32 %v397_v44, 0.0  ;;  %v456_v5 = vsub.f32 0.0, %v440_v47  ;;  %v1813_v8 = vmax.f32 %v405_v50, 0.0 }
 0x17f   : > { %1250 = vpow2.f32 %v469_v62  ;;  %v1815_v12 = vmax.f32 %v400_v58, 0.0  ;;  %v431_v13 = vand.u32 2147483647, %v1786_v28 }
 0x180   : > { %v1235_v59 = vpop.eup %1234  ;;  %v1818_v26 = vmul.f32 1.442695, %v456_v5  ;;  %v2198_v14 = vld [vmem:[#allocation18_spill] sm:$0xff] }
 0x181   : > { %v1237_v63 = vpop.eup %1236  ;;  %v500_v0 = vadd.f32 1.0, %v1235_v59  ;;  %v503_v1 = vmul.f32 -0.5, %v1235_v59  ;;  %v506_v11 = vand.u32 2147483647, %v1235_v59  ;;  %v1827_v38 = vsub.f32 0.0, %v431_v13 }
 0x182   : > { %v572_v6 = vadd.f32 1.0, %v1237_v63  ;;  %v575_v7 = vmul.f32 -0.5, %v1237_v63  ;;  %v1239_v9 = vpop.eup %1238  ;;  %v578_v18 = vand.u32 2147483647, %v1237_v63 }
 0x183   : > { %1252 = vlog2.f32 %v500_v0  ;;  %v1241_v16 = vpop.eup %1240  ;;  %v504_v17 = vadd.f32 1.0, %v503_v1  ;;  %v491_v19 = vadd.f32 1.0, %v1239_v9  ;;  %v494_v31 = vmul.f32 -0.5, %v1239_v9 }
 0x184   : > { %1254 = vlog2.f32 %v572_v6  ;;  %v576_v20 = vadd.f32 1.0, %v575_v7  ;;  %v563_v22 = vadd.f32 1.0, %v1241_v16  ;;  %v497_v32 = vand.u32 2147483647, %v1239_v9 }
 0x185   : > { %v1243_v30 = vpop.eup %1242  ;;  %1256 = vlog2.f32 %v491_v19  ;;  %v566_v33 = vmul.f32 -0.5, %v1241_v16  ;;  %vm1821_vm0 = vcmp.lt.f32.partialorder %v506_v11, 0.0004427343  ;;  %v505_v39 = vmul.f32 %v1235_v59, %v504_v17 }
 0x186   : > { %v1245_v34 = vpop.eup %1244  ;;  %1258 = vlog2.f32 %v563_v22  ;;  %v518_v36 = vadd.f32 1.0, %v1243_v30  ;;  %vm1829_vm3 = vcmp.lt.f32.partialorder %v578_v18, 0.0004427343  ;;  %v569_v44 = vand.u32 2147483647, %v1241_v16 }
 0x187   : > { %v521_v46 = vmul.f32 -0.5, %v1243_v30  ;;  %v1247_v47 = vpop.eup %1246  ;;  %v577_v50 = vmul.f32 %v1237_v63, %v576_v20  ;;  %v590_v54 = vadd.f32 1.0, %v1245_v34  ;;  %v593_v55 = vmul.f32 -0.5, %v1245_v34 }
 0x188   : > { %1260 = vlog2.f32 %v518_v36  ;;  %v1834_v58 = vpop.eup %1248  ;;  %v495_v62 = vadd.f32 1.0, %v494_v31  ;;  %vm1836_vm5 = vcmp.lt.f32.partialorder %v497_v32, 0.0004427343  ;;  %v567_v59 = vadd.f32 1.0, %v566_v33 }
 0x189   : > { %v524_v1 = vand.u32 2147483647, %v1243_v30  ;;  %v522_v5 = vadd.f32 1.0, %v521_v46  ;;  %1262 = vlog2.f32 %v590_v54  ;;  %v509_v6 = vadd.f32 1.0, %v1247_v47  ;;  %v1842_v7 = vpop.eup %1250 }
 0x18a   : > { %v512_v63 = vmul.f32 -0.5, %v1247_v47  ;;  %vm1844_vm8 = vcmp.lt.f32.partialorder %v569_v44, 0.0004427343  ;;  %v594_v13 = vadd.f32 1.0, %v593_v55  ;;  %v596_v17 = vand.u32 2147483647, %v1245_v34 }
 0x18b   : > { %v581_v18 = vadd.f32 1.0, %v1834_v58  ;;  %1264 = vlog2.f32 %v509_v6  ;;  %v515_v22 = vand.u32 2147483647, %v1247_v47  ;;  %v584_v31 = vmul.f32 -0.5, %v1834_v58 }
 0x18c   : > { %v513_v20 = vadd.f32 1.0, %v512_v63  ;;  %v496_v36 = vmul.f32 %v1239_v9, %v495_v62  ;;  %v568_v46 = vmul.f32 %v1241_v16, %v567_v59  ;;  %v523_v54 = vmul.f32 %v1243_v30, %v522_v5  ;;  %v756_v5 = vld [vmem:[#allocation2 + $0x8] sm:$0xff] }
 0x18d   : > { %v1253_v19 = vpop.eup %1252  ;;  %1266 = vlog2.f32 %v581_v18  ;;  %vm1851_vm10 = vcmp.lt.f32.partialorder %v524_v1, 0.0004427343  ;;  %v536_v27 = vadd.f32 1.0, %v1842_v7  ;;  %v1858_v63 = vmul.f32 %v1245_v34, %v594_v13 }
 0x18e   : > { %v1255_v32 = vpop.eup %1254  ;;  %v502_v33 = vmul.f32 0.6931472, %v1253_v19  ;;  %vm1860_vm11 = vcmp.lt.f32.partialorder %v596_v17, 0.0004427343  ;;  %v1865_v9 = vmul.f32 %v1247_v47, %v513_v20  ;;  %v587_v16 = vand.u32 2147483647, %v1834_v58 }
 0x18f   : > { %v574_v44 = vmul.f32 0.6931472, %v1255_v32  ;;  %v1257_v28 = vpop.eup %1256  ;;  %vm1871_vm13 = vcmp.lt.f32.partialorder %v515_v22, 0.0004427343  ;;  %1268 = vlog2.f32 %v536_v27  ;;  %v764_v17 = vld [vmem:[#allocation2 + $0x48] sm:$0xff]  ;;  %v758_v47 = vld [vmem:[#allocation2 + $0x18] sm:$0xff] }
 0x190   : > { %v508_v6 = vsel %vm1821_vm0, %v505_v39, %v502_v33  ;;  %v1259_v30 = vpop.eup %1258  ;;  %v493_v35 = vmul.f32 0.6931472, %v1257_v28  ;;  %v585_v39 = vadd.f32 1.0, %v584_v31  ;;  %v539_v28 = vmul.f32 -0.5, %v1842_v7  ;;  %vm1890_vm0 = vmand %vm713_vm4, %vm722_vm2 }
 0x191   : > { %v636_v62 = vadd.f32 %v508_v6, %v1784_v25  ;;  %v580_v59 = vsel %vm1829_vm3, %v577_v50, %v574_v44  ;;  %v565_v40 = vmul.f32 0.6931472, %v1259_v30  ;;  %1270 = vpow2.f32 %v1818_v26  ;;  %vm1908_vm3 = vmand %vm704_vm6, %vm722_vm2  ;;  %v763_v6 = vld [vmem:[#allocation2 + $0x40] sm:$0xff] }
 0x192   : > { %v644_v25 = vadd.f32 %v580_v59, %v1801_v49  ;;  %v1261_v50 = vpop.eup %1260  ;;  %v499_v51 = vsel %vm1836_vm5, %v496_v36, %v493_v35  ;;  %v542_v49 = vand.u32 2147483647, %v1842_v7  ;;  %v467_v11 = vmul.f32 1.442695, %v1827_v38  ;;  %v755_v36 = vld [vmem:[#allocation2] sm:$0xff]  ;;  %vm1921_vm4 = vmand %vm712_vm7, %vm722_vm2 }
 0x193   : > { %v652_v1 = vsub.f32 0.0, %v636_v62  ;;  %v635_v18 = vadd.f32 %v499_v51, %v1803_v56  ;;  %v571_v53 = vsel %vm1844_vm8, %v568_v46, %v565_v40  ;;  %v520_v19 = vmul.f32 0.6931472, %v1261_v50  ;;  %v1263_v20 = vpop.eup %1262  ;;  %vm726_vm6 = vmand %vm707_vm9, %vm722_vm2  ;;  %v766_v51 = vld [vmem:[#allocation2 + $0x58] sm:$0xff] }
 0x194   : > { %v660_v27 = vsub.f32 0.0, %v644_v25  ;;  %v643_v26 = vadd.f32 %v571_v53, %v1805_v57  ;;  %v586_v56 = vmul.f32 %v1834_v58, %v585_v39  ;;  %vm709_vm5 = vcmp.lt.s32.totalorder %v1780_v23, 300  ;;  %vm1948_vm7 = vmand %vm715_vm12, %vm722_vm2 }
 0x195   : > { %v740_v22 = vsel %vm1880_vm15, %v652_v1, 0.0  ;;  %v651_v33 = vsub.f32 0.0, %v635_v18  ;;  %v526_v57 = vsel %vm1851_vm10, %v523_v54, %v520_v19  ;;  %v1265_v38 = vpop.eup %1264  ;;  %v592_v62 = vmul.f32 0.6931472, %v1263_v20  ;;  %vm1961_vm9 = vmand %vm706_vm14, %vm722_vm2 }
 0x196   : > { %v772_v31 = vadd.f32 %v756_v5, %v740_v22  ;;  %v748_v32 = vsel %vm1890_vm0, %v660_v27, 0.0  ;;  %v659_v44 = vsub.f32 0.0, %v643_v26  ;;  %v638_v30 = vadd.f32 %v526_v57, %v1807_v60  ;;  %vm733_vm10 = vmand %vm714_vm1, %vm722_vm2 }
 0x197   : > { %v780_v46 = vadd.f32 %v764_v17, %v748_v32  ;;  %v1267_v59 = vpop.eup %1266  ;;  %v739_v4 = vsel %vm1908_vm3, %v651_v33, 0.0  ;;  %v511_v54 = vmul.f32 0.6931472, %v1265_v38  ;;  %v540_v55 = vadd.f32 1.0, %v539_v28  ;;  %v757_v17 = vld [vmem:[#allocation2 + $0x10] sm:$0xff]  ;;  %vm728_vm12 = vmand %vm709_vm5, %vm722_vm2 }
 0x198   : > { %788 = vst [vmem:[#allocation2 + $0x8] sm:$0xff] %v772_v31  ;;  %1272 = vpow2.f32 %v467_v11  ;;  %v771_v35 = vadd.f32 %v755_v36, %v739_v4  ;;  %v747_v39 = vsel %vm1921_vm4, %v659_v44, 0.0  ;;  %v654_v60 = vsub.f32 0.0, %v638_v30  ;;  %v760_v36 = vld [vmem:[#allocation2 + $0x28] sm:$0xff] }
 0x199   : > { %796 = vst [vmem:[#allocation2 + $0x48] sm:$0xff] %v780_v46  ;;  %v598_v25 = vsel %vm1860_vm11, %v1858_v63, %v592_v62  ;;  %v779_v40 = vadd.f32 %v763_v6, %v747_v39  ;;  %v517_v10 = vsel %vm1871_vm13, %v1865_v9, %v511_v54  ;;  %v583_v28 = vmul.f32 0.6931472, %v1267_v59  ;;  %v1269_v9 = vpop.eup %1268 }
 0x19a   : > { %v646_v50 = vadd.f32 %v598_v25, %v1809_v61  ;;  %787 = vst [vmem:[#allocation2] sm:$0xff] %v771_v35  ;;  %v742_v1 = vsel %vm726_vm6, %v654_v60, 0.0  ;;  %v637_v24 = vadd.f32 %v517_v10, %v1811_v2  ;;  %vm588_vm8 = vcmp.lt.f32.partialorder %v587_v16, 0.0004427343  ;;  %v2197_v35 = vld [vmem:[#allocation17_spill] sm:$0xff] }
 0x19b   : > { %v2194_v61 = vand.u32 2147483647, %v1788_v29  ;;  %795 = vst [vmem:[#allocation2 + $0x40] sm:$0xff] %v779_v40  ;;  %v774_v34 = vadd.f32 %v758_v47, %v742_v1  ;;  %v589_v2 = vsel %vm588_vm8, %v586_v56, %v583_v28  ;;  %v541_v58 = vmul.f32 %v1842_v7, %v540_v55  ;;  %v1966_v16 = vpop.eup %1270  ;;  %v765_v56 = vld [vmem:[#allocation2 + $0x50] sm:$0xff] }
 0x19c   : > { %v662_v13 = vsub.f32 0.0, %v646_v50  ;;  %v653_v27 = vsub.f32 0.0, %v637_v24  ;;  %v645_v18 = vadd.f32 %v589_v2, %v1813_v8  ;;  %v538_v53 = vmul.f32 0.6931472, %v1269_v9 }
 0x19d   : > { %v455_v63 = vsub.f32 0.0, %v2194_v61  ;;  %790 = vst [vmem:[#allocation2 + $0x18] sm:$0xff] %v774_v34  ;;  %vm543_vm11 = vcmp.lt.f32.partialorder %v542_v49, 0.0004427343  ;;  %v608_v15 = vadd.f32 1.0, %v1966_v16  ;;  %v611_v38 = vmul.f32 -0.5, %v1966_v16 }
 0x19e   : > { %v750_v20 = vsel %vm1948_vm7, %v662_v13, 0.0  ;;  %v434_v22 = vand.u32 2147483647, %v1792_v37  ;;  %v741_v8 = vsel %vm1961_vm9, %v653_v27, 0.0  ;;  %v661_v26 = vsub.f32 0.0, %v645_v18 }
 0x19f   : > { %v483_v19 = vmul.f32 1.442695, %v455_v63  ;;  %v782_v0 = vadd.f32 %v766_v51, %v750_v20  ;;  %v544_v11 = vsel %vm543_vm11, %v541_v58, %v538_v53  ;;  %v773_v31 = vadd.f32 %v757_v17, %v741_v8 }
 0x1a0   : > { %v640_v32 = vadd.f32 %v544_v11, %v1815_v12  ;;  %1274 = vlog2.f32 %v608_v15  ;;  %v749_v21 = vsel %vm733_vm10, %v661_v26, 0.0  ;;  %v450_v57 = vsub.f32 0.0, %v434_v22 }
 0x1a1   : > { %798 = vst [vmem:[#allocation2 + $0x58] sm:$0xff] %v782_v0  ;;  %1276 = vpow2.f32 %v483_v19  ;;  %789 = vst [vmem:[#allocation2 + $0x10] sm:$0xff] %v773_v31  ;;  %v781_v49 = vadd.f32 %v765_v56, %v749_v21  ;;  %v442_v6 = vand.u32 2147483647, %v1794_v41  ;;  %v701_v23 = vadd.s32 %v1734_v45, %v684_v3  ;;  %v768_v19 = vld [vmem:[#allocation2 + $0x68] sm:$0xff] }
 0x1a2   : > { %v1273_v7 = vpop.eup %1272  ;;  %v656_v33 = vsub.f32 0.0, %v640_v32  ;;  %v473_v44 = vmul.f32 1.442695, %v450_v57  ;;  %v675_v62 = vadd.s32 32, %v1730_v42  ;;  %v612_v4 = vadd.f32 1.0, %v611_v38 }
 0x1a3   : > { %v527_v12 = vadd.f32 1.0, %v1273_v7  ;;  %797 = vst [vmem:[#allocation2 + $0x50] sm:$0xff] %v781_v49  ;;  %v458_v59 = vsub.f32 0.0, %v442_v6  ;;  %v433_v54 = vand.u32 2147483647, %v1796_v43  ;;  %v408_v39 = vsub.f32 0.0, %v2197_v35 }
 0x1a4   : > { %v744_v46 = vsel %vm728_vm12, %v656_v33, 0.0  ;;  %v441_v55 = vand.u32 2147483647, %v1799_v48  ;;  %v614_v60 = vand.u32 2147483647, %v1966_v16  ;;  %v530_v47 = vmul.f32 -0.5, %v1273_v7 }
 0x1a5   : > { %v776_v30 = vadd.f32 %v760_v36, %v744_v46  ;;  %1278 = vlog2.f32 %v527_v12  ;;  %v489_v25 = vmul.f32 1.442695, %v458_v59  ;;  %v449_v40 = vsub.f32 0.0, %v433_v54  ;;  %v759_v36 = vld [vmem:[#allocation2 + $0x20] sm:$0xff] }
 0x1a6   : > { %1280 = vpow2.f32 %v473_v44  ;;  %v457_v50 = vsub.f32 0.0, %v441_v55  ;;  %vm717_vm13 = vcmp.lt.s32.totalorder %v701_v23, 300  ;;  %v692_v28 = vadd.s32 %v1734_v45, %v675_v62 }
 0x1a7   : > { %792 = vst [vmem:[#allocation2 + $0x28] sm:$0xff] %v776_v30  ;;  %1282 = vpow2.f32 %v489_v25  ;;  %v613_v24 = vmul.f32 %v1966_v16, %v612_v4  ;;  %v471_v61 = vmul.f32 1.442695, %v449_v40  ;;  %v424_v9 = vmax.f32 %v408_v39, 0.0  ;;  %vm736_vm15 = vmand %vm717_vm13, %vm722_vm2 }
 0x1a8   : > { %v487_v63 = vmul.f32 1.442695, %v457_v50  ;;  %vm615_vm14 = vcmp.lt.f32.partialorder %v614_v60, 0.0004427343  ;;  %v531_v34 = vadd.f32 1.0, %v530_v47  ;;  %v399_v2 = vsub.f32 0.0, %v2198_v14 }
 0x1a9   : > { %v533_v58 = vand.u32 2147483647, %v1273_v7  ;;  %1284 = vpow2.f32 %v471_v61  ;;  %v683_v17 = vadd.s32 96, %v1730_v42  ;;  %vm708_vm0 = vcmp.lt.s32.totalorder %v692_v28, 300  ;;  %v767_v61 = vld [vmem:[#allocation2 + $0x60] sm:$0xff] }
 0x1aa   : > { %v1275_v10 = vpop.eup %1274  ;;  %v532_v15 = vmul.f32 %v1273_v7, %v531_v34  ;;  %v415_v22 = vmax.f32 %v399_v2, 0.0  ;;  %v678_v21 = vadd.s32 56, %v1730_v42  ;;  %vm727_vm3 = vmand %vm708_vm0, %vm722_vm2  ;;  %v407_v7 = vsub.f32 0.0, %v1788_v29 }
 0x1ab   : > { %v1277_v1 = vpop.eup %1276  ;;  %v610_v5 = vmul.f32 0.6931472, %v1275_v10  ;;  %vm534_vm1 = vcmp.lt.f32.partialorder %v533_v58, 0.0004427343  ;;  %v700_v11 = vadd.s32 %v1734_v45, %v683_v17  ;;  %v686_v29 = vadd.s32 120, %v1730_v42 }
 0x1ac   : > { %v599_v13 = vadd.f32 1.0, %v1277_v1  ;;  %v602_v0 = vmul.f32 -0.5, %v1277_v1  ;;  %v605_v57 = vand.u32 2147483647, %v1277_v1  ;;  %v695_v6 = vadd.s32 %v1734_v45, %v678_v21 }
 0x1ad   : > { %v616_v51 = vsel %vm615_vm14, %v613_v24, %v610_v5  ;;  %vm716_vm4 = vcmp.lt.s32.totalorder %v700_v11, 300  ;;  %v423_v62 = vmax.f32 %v407_v7, 0.0  ;;  %v402_v35 = vsub.f32 0.0, %v1792_v37 }
 0x1ae   : > { %v648_v27 = vadd.f32 %v616_v51, %v424_v9  ;;  %1286 = vlog2.f32 %v599_v13  ;;  %v603_v3 = vadd.f32 1.0, %v602_v0  ;;  %vm606_vm5 = vcmp.lt.f32.partialorder %v605_v57, 0.0004427343  ;;  %vm735_vm6 = vmand %vm716_vm4, %vm722_vm2 }
 0x1af   : > { %v1279_v18 = vpop.eup %1278  ;;  %1288 = vpow2.f32 %v487_v63  ;;  %v703_v10 = vadd.s32 %v1734_v45, %v686_v29  ;;  %v418_v37 = vmax.f32 %v402_v35, 0.0  ;;  %vm711_vm7 = vcmp.lt.s32.totalorder %v695_v6, 300 }
 0x1b0   : > { %v2002_v16 = vpop.eup %1280  ;;  %v664_v53 = vsub.f32 0.0, %v648_v27  ;;  %v529_v20 = vmul.f32 0.6931472, %v1279_v18  ;;  %v604_v55 = vmul.f32 %v1277_v1, %v603_v3  ;;  %v677_v5 = vadd.s32 48, %v1730_v42  ;;  %vm2040_vm10 = vmand %vm711_vm7, %vm722_vm2 }
 0x1b1   : > { %v554_v8 = vadd.f32 1.0, %v2002_v16  ;;  %v2007_v49 = vpop.eup %1282  ;;  %v557_v12 = vmul.f32 -0.5, %v2002_v16  ;;  %v560_v40 = vand.u32 2147483647, %v2002_v16  ;;  %v410_v13 = vsub.f32 0.0, %v1794_v41 }
 0x1b2   : > { %v752_v26 = vsel %vm736_vm15, %v664_v53, 0.0  ;;  %v535_v56 = vsel %vm534_vm1, %v532_v15, %v529_v20  ;;  %v626_v38 = vadd.f32 1.0, %v2007_v49  ;;  %v629_v60 = vmul.f32 -0.5, %v2007_v49 }
 0x1b3   : > { %v784_v31 = vadd.f32 %v768_v19, %v752_v26  ;;  %v639_v32 = vadd.f32 %v535_v56, %v415_v22  ;;  %1290 = vlog2.f32 %v554_v8  ;;  %v2014_v46 = vpop.eup %1284  ;;  %v558_v39 = vadd.f32 1.0, %v557_v12  ;;  %v762_v8 = vld [vmem:[#allocation2 + $0x38] sm:$0xff] }
 0x1b4   : > { %1292 = vlog2.f32 %v626_v38  ;;  %v545_v59 = vadd.f32 1.0, %v2014_v46  ;;  %v548_v1 = vmul.f32 -0.5, %v2014_v46  ;;  %v630_v34 = vadd.f32 1.0, %v629_v60  ;;  %v770_v12 = vld [vmem:[#allocation2 + $0x78] sm:$0xff] }
 0x1b5   : > { %800 = vst [vmem:[#allocation2 + $0x68] sm:$0xff] %v784_v31  ;;  %v655_v33 = vsub.f32 0.0, %v639_v32  ;;  %v559_v9 = vmul.f32 %v2002_v16, %v558_v39  ;;  %vm561_vm8 = vcmp.lt.f32.partialorder %v560_v40, 0.0004427343  ;;  %v632_v51 = vand.u32 2147483647, %v2007_v49 }
 0x1b6   : > { %1294 = vlog2.f32 %v545_v59  ;;  %vm719_vm9 = vcmp.lt.s32.totalorder %v703_v10, 300  ;;  %v685_v27 = vadd.s32 112, %v1730_v42  ;;  %v549_v19 = vadd.f32 1.0, %v548_v1  ;;  %v769_v39 = vld [vmem:[#allocation2 + $0x70] sm:$0xff]  ;;  %v807_v40 = vld [vmem:[#allocation2] sm:$0xff] (!%p974_p7) }
 0x1b7   : > { %v743_v44 = vsel %vm727_vm3, %v655_v33, 0.0  ;;  %v694_v20 = vadd.s32 %v1734_v45, %v677_v5  ;;  %v631_v15 = vmul.f32 %v2007_v49, %v630_v34  ;;  %v401_v22 = vsub.f32 0.0, %v1796_v43  ;;  %vm738_vm12 = vmand %vm719_vm9, %vm722_vm2  ;;  %v809_v10 = vld [vmem:[#allocation2 + $0x10] sm:$0xff] (!%p974_p7) }
 0x1b8   : > { %v1287_v30 = vpop.eup %1286  ;;  %v775_v23 = vadd.f32 %v759_v36, %v743_v44  ;;  %v551_v42 = vand.u32 2147483647, %v2014_v46  ;;  %v426_v26 = vmax.f32 %v410_v13, 0.0  ;;  %vm633_vm11 = vcmp.lt.f32.partialorder %v632_v51, 0.0004427343  ;;  %v815_v51 = vld [vmem:[#allocation2 + $0x40] sm:$0xff] (!%p974_p7) }
 0x1b9   : > { %v2019_v4 = vpop.eup %1288  ;;  %v601_v54 = vmul.f32 0.6931472, %v1287_v30  ;;  %v409_v32 = vsub.f32 0.0, %v1799_v48  ;;  %v702_v7 = vadd.s32 %v1734_v45, %v685_v27  ;;  %v550_v36 = vmul.f32 %v2014_v46, %v549_v19  ;;  %v817_v27 = vld [vmem:[#allocation2 + $0x50] sm:$0xff] (!%p974_p7) }
 0x1ba   : > { %791 = vst [vmem:[#allocation2 + $0x20] sm:$0xff] %v775_v23  ;;  %v617_v47 = vadd.f32 1.0, %v2019_v4  ;;  %v620_v14 = vmul.f32 -0.5, %v2019_v4  ;;  %v623_v21 = vand.u32 2147483647, %v2019_v4  ;;  %v417_v38 = vmax.f32 %v401_v22, 0.0 }
 0x1bb   : > { %v607_v25 = vsel %vm606_vm5, %v604_v55, %v601_v54  ;;  %vm552_vm13 = vcmp.lt.f32.partialorder %v551_v42, 0.0004427343  ;;  %vm710_vm14 = vcmp.lt.s32.totalorder %v694_v20, 300  ;;  %v425_v23 = vmax.f32 %v409_v32, 0.0  ;;  %v761_v54 = vld [vmem:[#allocation2 + $0x30] sm:$0xff] }
 0x1bc   : > { %v647_v50 = vadd.f32 %v607_v25, %v423_v62  ;;  %1296 = vlog2.f32 %v617_v47  ;;  %v621_v56 = vadd.f32 1.0, %v620_v14  ;;  %vm624_vm15 = vcmp.lt.f32.partialorder %v623_v21, 0.0004427343  ;;  %vm729_vm1 = vmand %vm710_vm14, %vm722_vm2  ;;  %v820_v41 = vld [vmem:[#allocation2 + $0x68] sm:$0xff] (!%p974_p7) }
 0x1bd   : > { %v1291_v28 = vpop.eup %1290  ;;  %vm718_vm0 = vcmp.lt.s32.totalorder %v702_v7, 300 }
 0x1be   : > { %v663_v24 = vsub.f32 0.0, %v647_v50  ;;  %v556_v63 = vmul.f32 0.6931472, %v1291_v28  ;;  %v1293_v17 = vpop.eup %1292  ;;  %v622_v6 = vmul.f32 %v2019_v4, %v621_v56  ;;  %vm737_vm3 = vmand %vm718_vm0, %vm722_vm2  ;;  %v808_v50 = vld [vmem:[#allocation2 + $0x8] sm:$0xff] (!%p974_p7) }
 0x1bf   : > { %v628_v16 = vmul.f32 0.6931472, %v1293_v17  ;;  %v823_v28 = vadd.f32 (!%p974_p7), %v808_v50, %v807_v40 }
 0x1c0   : > { %v751_v2 = vsel %vm735_vm6, %v663_v24, 0.0  ;;  %v562_v58 = vsel %vm561_vm8, %v559_v9, %v556_v63  ;;  %v1295_v11 = vpop.eup %1294  ;;  %v812_v24 = vld [vmem:[#allocation2 + $0x28] sm:$0xff] (!%p974_p7) }
 0x1c1   : > { %v783_v18 = vadd.f32 %v767_v61, %v751_v2  ;;  %v642_v53 = vadd.f32 %v562_v58, %v418_v37  ;;  %v634_v31 = vsel %vm633_vm11, %v631_v15, %v628_v16  ;;  %v547_v33 = vmul.f32 0.6931472, %v1295_v11  ;;  %v810_v37 = vld [vmem:[#allocation2 + $0x18] sm:$0xff] (!%p974_p7)  ;;  %v811_v52 = vld [vmem:[#allocation2 + $0x20] sm:$0xff] (!%p974_p7)  ;;  %v816_v2 = vld [vmem:[#allocation2 + $0x48] sm:$0xff] (!%p974_p7) }
 0x1c2   : > { %v650_v43 = vadd.f32 %v634_v31, %v426_v26  ;;  %v824_v1 = vadd.f32 (!%p974_p7), %v823_v28, %v809_v10 }
 0x1c3   : > { %799 = vst [vmem:[#allocation2 + $0x60] sm:$0xff] %v783_v18  ;;  %v658_v0 = vsub.f32 0.0, %v642_v53  ;;  %v553_v44 = vsel %vm552_vm13, %v550_v36, %v547_v33  ;;  %v818_v18 = vld [vmem:[#allocation2 + $0x58] sm:$0xff] (!%p974_p7) }
 0x1c4   : > { %v666_v48 = vsub.f32 0.0, %v650_v43  ;;  %v641_v30 = vadd.f32 %v553_v44, %v417_v38  ;;  %v825_v5 = vadd.f32 (!%p974_p7), %v824_v1, %v810_v37 }
 0x1c5   : > { %v746_v49 = vsel %vm2040_vm10, %v658_v0, 0.0 }
 0x1c6   : > { %v1297_v3 = vpop.eup %1296  ;;  %v778_v57 = vadd.f32 %v762_v8, %v746_v49  ;;  %v754_v46 = vsel %vm738_vm12, %v666_v48, 0.0  ;;  %v657_v59 = vsub.f32 0.0, %v641_v30  ;;  %v826_v61 = vadd.f32 (!%p974_p7), %v825_v5, %v811_v52 }
 0x1c7   : > { %v619_v45 = vmul.f32 0.6931472, %v1297_v3  ;;  %v786_v29 = vadd.f32 %v770_v12, %v754_v46 }
 0x1c8   : > { %794 = vst [vmem:[#allocation2 + $0x38] sm:$0xff] %v778_v57  ;;  %v745_v35 = vsel %vm729_vm1, %v657_v59, 0.0  ;;  %v827_v9 = vadd.f32 (!%p974_p7), %v826_v61, %v812_v24 }
 0x1c9   : > { %v625_v62 = vsel %vm624_vm15, %v622_v6, %v619_v45  ;;  %802 = vst [vmem:[#allocation2 + $0x78] sm:$0xff] %v786_v29  ;;  %v777_v60 = vadd.f32 %v761_v54, %v745_v35 }
 0x1ca   : > { %v649_v55 = vadd.f32 %v625_v62, %v425_v23  ;;  %v819_v19 = vld [vmem:[#allocation2 + $0x60] sm:$0xff] (!%p974_p7) }
 0x1cb   : > { %793 = vst [vmem:[#allocation2 + $0x30] sm:$0xff] %v777_v60  ;;  %806 = sbr.rel (%p974_p7) target bundleno = 693 (0x2b5), region = 44 }
 0x1cc   : > { %v665_v4 = vsub.f32 0.0, %v649_v55 }
 0x1ce   : > { %v753_v47 = vsel %vm737_vm3, %v665_v4, 0.0 }
 0x1cf   : > { %v785_v25 = vadd.f32 %v769_v39, %v753_v47  ;;  %v814_v34 = vld [vmem:[#allocation2 + $0x38] sm:$0xff] (!%p974_p7) }
 0x1d0   : > { %v822_v42 = vld [vmem:[#allocation2 + $0x78] sm:$0xff] (!%p974_p7) }
 0x1d1   : > { %801 = vst [vmem:[#allocation2 + $0x70] sm:$0xff] %v785_v25 }
 0x1d2   : > { %v813_v63 = vld [vmem:[#allocation2 + $0x30] sm:$0xff] }
 0x1d3   : > { %v828_v13 = vadd.f32 %v827_v9, %v813_v63 }
 0x1d5   : > { %v829_v14 = vadd.f32 %v828_v13, %v814_v34 }
 0x1d7   : > { %v830_v58 = vadd.f32 %v829_v14, %v815_v51 }
 0x1d8   : > { %v821_v15 = vld [vmem:[#allocation2 + $0x70] sm:$0xff] }
 0x1d9   : > { %v831_v17 = vadd.f32 %v830_v58, %v816_v2 }
 0x1db   : > { %v832_v53 = vadd.f32 %v831_v17, %v817_v27 }
 0x1dd   : > { %v833_v20 = vadd.f32 %v832_v53, %v818_v18 }
 0x1df   : > { %v834_v16 = vadd.f32 %v833_v20, %v819_v19 }
 0x1e1   : > { %v835_v22 = vadd.f32 %v834_v16, %v820_v41 }
 0x1e3   : > { %v836_v0 = vadd.f32 %v835_v22, %v821_v15 }
 0x1e5   : > { %v837_v8 = vadd.f32 %v836_v0, %v822_v42 }
 0x1e7   : > { %838 = vadd.xlane.f32.xlu0 %v837_v8 }
 0x274   : > { %v839_v26 = vpop.xlane.xlu0 %838 }
 0x275   : > { %v840_v56 = vrot.slane %v839_v26, 4 }
 0x277   : > { %v841_v11 = vadd.f32 %v840_v56, %v839_v26 }
 0x279   : > { %v842_v31 = vrot.slane %v841_v11, 2 }
 0x27b   : > { %v843_v32 = vadd.f32 %v842_v31, %v841_v11 }
 0x27d   : > { %v844_v21 = vrot.slane %v843_v32, 1 }
 0x27f   : > { %v845_v7 = vadd.f32 %v844_v21, %v843_v32 }
 0x281   : > { %1116 = vpush %v845_v7 }
 0x2b2   : > { %s1117_s15 = spop %1116 }
 0x2b3   : > { %v847_v49 = vstv %s1117_s15 }
 0x2b4   : > { %848 = vst [vmem:[%s194_s26] sm:$0xff] %v847_v49 }
 0x2b5 PF: > { %s2201_s3 = sld [smem:[#allocation13_spill]]  ;;  %s2202_s7 = sld [smem:[#allocation15_spill]] }
 0x2b6   : > { %s2203_s12 = sld [smem:[#allocation20_spill]]  ;;  %s863_s21 = sshll.u32 %s194_s26, 4  ;;  %s864_s21 = int_to_ptr.vmem [resolvable:$true] %s863_s21 }
 0x2b7   : > { %s850_s2 = scalar_lea.sflag [#allocation5], %s192_s9  ;;  %s1356_s17 = scalar_lea.vmem %s864_s21, 128 }
 0x2b8   : > { %p1357_p9 = scmp.ne.s32.totalorder %s864_s21, %s1356_s17  ;;  %s1489_s24 = smov [#allocation8]  }
 0x2b9   : > { %s1360_s22 = sshll.u32 %s1489_s24, 4  ;;  %s1361_s22 = int_to_ptr.vmem [resolvable:$false] %s1360_s22 }
 0x2ba   : > { %s1362_s23 = scalar_lea.vmem %s1361_s22, 256  ;;  %p1363_p2 = scmp.lt.s32.totalorder %s864_s21, %s1361_s22 }
 0x2bb   : > { %s976_s29 = sshll.u32 %s2201_s3, 7  ;;  %p2205_p11 = scmp.ne.s32.totalorder %s2202_s7, 0 }
 0x2bc   : > { %s2204_s27 = smov %s2203_s12  ;;  %s2068_s30 = scalar_lea.hbm %s2203_s12, %s976_s29 }
 0x2bd   : > { %p1358_p13 = pnand %p1357_p9, %p2205_p11  ;;  %p1364_p5 = scmp.lt.s32.totalorder %s1362_s23, %s1356_s17 }
 0x2bf   : > { %p1359_p0 = pneg %p1358_p13  ;;  %p1365_p8 = por %p1364_p5, %p1363_p2 }
 0x2c1   : > { %p1366_p12 = pnand %p1365_p8, %p1359_p0 }
 0x2c3   : > { %1369 = shalt.err (!%p1366_p12)
}
 0x2c4   : > { %s1370_s9 = scalar_lea.hbm %s2068_s30, 128  ;;  %s1374_s20 = scalar_lea.hbm %s2204_s27, 256 }
 0x2c5   : > { %p1371_p1 = scmp.ne.s32.totalorder %s2068_s30, %s1370_s9  ;;  %p1375_p3 = scmp.lt.u32.totalorder %s2068_s30, %s2204_s27 }
 0x2c6   : > { %p1376_p4 = scmp.lt.u32.totalorder %s1374_s20, %s1370_s9  ;;  %p1378_p9 = scmp.lt.u32.totalorder %s1370_s9, %s2068_s30 }
 0x2c7   : > { %p1372_p6 = pnand %p1371_p1, %p2205_p11 }
 0x2c8   : > { %p1377_p7 = por %p1376_p4, %p1375_p3 }
 0x2c9   : > { %p1373_p10 = pneg %p1372_p6 }
 0x2ca   : > { %p1379_p13 = por %p1378_p9, %p1377_p7 }
 0x2cc   : > { %p1380_p0 = pnand %p1379_p13, %p1373_p10 }
 0x2ce   : > { %1383 = shalt.err (!%p1380_p0)
}
 0x2cf   : > { %1124 = dma.vmem_to_hbm [thread:$0]  (%p2205_p11), %s864_s21, 128, %s2068_s30, %s850_s2  }
 0x2d0 PF: > { %s2206_s3 = sld [smem:[#allocation12_spill]]  ;;  %s2207_s29 = sld [smem:[#allocation16_spill]] }
 0x2d1   : > { %p1141_p2 = scmp.ge.s32.totalorder %s1482_s19, 2 }
 0x2d6   : > { %s875_s28 = sand.u32 1, %s2206_s3   ;;  %p2208_p5 = scmp.ne.s32.totalorder %s2207_s29, 0 }
 0x2d7   : > { %s876_s8 = scalar_lea.sflag [#allocation5], %s875_s28 }
 0x2d8   : > { %p1135_p8 = pnand %p1141_p2, %p2208_p5 }
 0x2da   : > { %1437 = dma.done.wait (!%p1135_p8), %s876_s8, 128  }
 0x2db   : > { %1439 = vsyncadd (!%p1135_p8), %s876_s8, 4294967168  ;;  %s19_s19 = sadd.s32 1, %s1482_s19   ;;  %s2209_s15 = sld [smem:[#allocation14_spill]] }
 0x2dc   : > { %p16_p12 = scmp.ge.s32.totalorder %s19_s19, 6   ;;  %s2210_s9 = smov %s1446_s10 }
 0x2dd   : > { %s2211_s10 = smov %s1450_s11  ;;  %s2212_s11 = smov %s1641_s6 }
 0x2de   : > { %s2213_s12 = smov %s1458_s13  ;;  %s2214_s13 = smov %s1462_s14 }
 0x2df   : > { %s2215_s14 = smov %s1644_s1  ;;  %s2216_s16 = smov %s1478_s18 }
 0x2e0   : > { %s2217_s17 = smov %s2220_s4  ;;  %s2218_s18 = smov %s2224_s5 }
 0x2e1   :  { %18 = sbr.rel (!%p16_p12) target bundleno = 13 (0xd), region = 85 }
 0x2e8   :  { %881 = vsyncpa [#allocation4], 1 }
 0x2e9   :  { %883 = vsyncpa [#allocation4 + $0x1], 1 }
 0x2ea   :  { %884 = vsyncpa [#allocation7], 1 }
 0x2eb   :  { %885 = vsyncpa [#allocation5], 1 }
 0x2ec   :  { %887 = vsyncpa [#allocation5 + $0x1], 1 }

</bundles_post_ra>
